<compile_context>
chip_gen: v6e
topology: v6e:2x2x1
jax: 0.10.0
libtpu: 0.0.40
codegen_flags: <defaults>
</compile_context>

<pallas_src>
import jax
import jax.numpy as jnp
import numpy as np
from jax.experimental import pallas as pl
from jax.experimental.pallas import tpu as pltpu

LANE = 1024            # lane-dense last dim (large multiple of 128 -> unmasked vst)
MAX_BLOCK_ROWS = 1024  # (1024, 1024) f32 block = 4 MiB per buffer
TINY_N = 2048          # below this, kernel launch overhead dominates -> plain JAX


def _round_up(a, m):
    return ((a + m - 1) // m) * m


def logistic_kernel(wb_ref, x_ref, o_ref):
    # wb_ref: SMEM (2,) -> [w, b]; x_ref / o_ref: VMEM (block_rows, LANE) f32 tiles.
    w = wb_ref[0]
    b = wb_ref[1]
    z = w * x_ref[...] + b
    # sigmoid(z) = 0.5 * tanh(0.5 * z) + 0.5 : exactly one EUP transcendental
    # per element (vs exp + vrcp), numerically stable for any finite z.
    o_ref[...] = 0.5 * jnp.tanh(0.5 * z) + 0.5


def _logistic_pallas_2d(xp, wb):
    """Apply the kernel to a densely packed (rows, LANE) f32 slab."""
    rows = xp.shape[0]

    # Aim for >=2 grid steps (v7x megacore) while capping block size at 4 MiB.
    block_rows = min(MAX_BLOCK_ROWS, _round_up(pl.cdiv(rows, 2), 8))
    if block_rows >= rows:
        block_rows = rows  # single full-extent block (allowed for any rows)

    grid = (pl.cdiv(rows, block_rows),)  # final partial block masked by Pallas

    return pl.pallas_call(
        logistic_kernel,
        out_shape=jax.ShapeDtypeStruct((rows, LANE), jnp.float32),
        grid=grid,
        in_specs=[
            pl.BlockSpec(memory_space=pltpu.MemorySpace.SMEM),   # scalars [w, b]
            pl.BlockSpec((block_rows, LANE), lambda i: (i, 0)),  # x tile
        ],
        out_specs=pl.BlockSpec((block_rows, LANE), lambda i: (i, 0)),
        compiler_params=pltpu.CompilerParams(
            dimension_semantics=("parallel",),   # shard row blocks across TCs
            vmem_limit_bytes=32 * 1024 * 1024,   # covers 4 MiB blocks on v5e..v7x
        ),
    )(wb, xp)


def logistic_forward(x, w, b):
    """y = sigmoid(w * x + b), elementwise, matching LogisticModel.forward."""
    x = x.astype(jnp.float32).reshape(-1)
    n = x.shape[0]
    w32 = jnp.float32(w)
    b32 = jnp.float32(b)

    # Tiny-input fast path: kernel launch + packing would dominate.
    if n < TINY_N:
        return jax.nn.sigmoid(w32 * x + b32)

    wb = jnp.array([w, b], dtype=jnp.float32)
    m = (n // LANE) * LANE  # LANE-aligned prefix length

    if m == n:
        # Free reshape, no padding, no output slice.
        return _logistic_pallas_2d(x.reshape(m // LANE, LANE), wb).reshape(-1)

    # Ragged tail (< LANE elems): aligned prefix in the kernel, tail in plain JAX.
    head = _logistic_pallas_2d(x[:m].reshape(m // LANE, LANE), wb).reshape(-1)
    tail = jax.nn.sigmoid(w32 * x[m:] + b32)
    return jnp.concatenate([head, tail])


if __name__ == "__main__":
    # Parameters matching the module's construction: LogisticModel(w=1.0, b=1.0).
    w = 1.0
    b = 1.0

    # 1) The exact input from the original script (tiny -> fast path).
    x_small = jnp.array([1, 5, 10, 10, 25, 50, 70, 75, 100], dtype=jnp.float32)
    y_small = jax.block_until_ready(logistic_forward(x_small, w, b))
    np.testing.assert_allclose(
        np.asarray(y_small), np.asarray(jax.nn.sigmoid(w * x_small + b)),
        rtol=1e-6, atol=1e-6)

    # 2) Deterministic larger inputs that exercise the Pallas kernel itself.
    key = jax.random.PRNGKey(0)
    k1, k2 = jax.random.split(key)

    # LANE-aligned case (pure reshape, partial final row-block masked by Pallas).
    x_aligned = jax.random.uniform(k1, (20 * LANE,), dtype=jnp.float32,
                                   minval=-50.0, maxval=50.0)
    y_aligned = jax.block_until_ready(logistic_forward(x_aligned, w, b))
    np.testing.assert_allclose(
        np.asarray(y_aligned), np.asarray(jax.nn.sigmoid(w * x_aligned + b)),
        rtol=1e-5, atol=1e-5)

    # Ragged case (aligned prefix in the kernel + tiny JAX tail).
    x_ragged = jax.random.uniform(k2, (5000,), dtype=jnp.float32,
                                  minval=-50.0, maxval=50.0)
    y_ragged = jax.block_until_ready(logistic_forward(x_ragged, w, b))
    np.testing.assert_allclose(
        np.asarray(y_ragged), np.asarray(jax.nn.sigmoid(w * x_ragged + b)),
        rtol=1e-5, atol=1e-5)

    print("KERNEL_OK")
</pallas_src>

<mosaic_0001>
module attributes {stable_mosaic.version = 11 : i64} {
  func.func @logistic_kernel(%arg0: i32, %arg1: memref<2xf32, #tpu.memory_space<smem>>, %arg2: memref<16x1024xf32, #tpu.memory_space<vmem>>, %arg3: memref<16x1024xf32, #tpu.memory_space<vmem>>) attributes {dimension_semantics = [#tpu.dimension_semantics<parallel>], iteration_bounds = array<i64: 2>, scalar_prefetch = 0 : i64, scratch_operands = 0 : i64, tpu.core_type = #tpu.core_type<tc>, window_params = [{transform_indices = @transform_0, window_bounds = array<i64: 2>}, {transform_indices = @transform_1, window_bounds = array<i64: 16, 1024>}, {transform_indices = @transform_2, window_bounds = array<i64: 16, 1024>}]} {
    %c0 = arith.constant 0 : index
    %0 = memref.load %arg1[%c0] : memref<2xf32, #tpu.memory_space<smem>>
    %c1 = arith.constant 1 : index
    %1 = memref.load %arg1[%c1] : memref<2xf32, #tpu.memory_space<smem>>
    %c0_0 = arith.constant 0 : index
    %c0_1 = arith.constant 0 : index
    %2 = vector.load %arg2[%c0_0, %c0_1] : memref<16x1024xf32, #tpu.memory_space<vmem>>, vector<16x1024xf32>
    %3 = vector.broadcast %0 : f32 to vector<16x1024xf32>
    %4 = arith.mulf %3, %2 : vector<16x1024xf32>
    %5 = vector.broadcast %1 : f32 to vector<16x1024xf32>
    %6 = arith.addf %4, %5 : vector<16x1024xf32>
    %cst = arith.constant 5.000000e-01 : f32
    %7 = vector.broadcast %cst : f32 to vector<16x1024xf32>
    %8 = arith.mulf %7, %6 : vector<16x1024xf32>
    %9 = math.tanh %8 : vector<16x1024xf32>
    %cst_2 = arith.constant 5.000000e-01 : f32
    %10 = vector.broadcast %cst_2 : f32 to vector<16x1024xf32>
    %11 = arith.mulf %10, %9 : vector<16x1024xf32>
    %cst_3 = arith.constant 5.000000e-01 : f32
    %12 = vector.broadcast %cst_3 : f32 to vector<16x1024xf32>
    %13 = arith.addf %11, %12 : vector<16x1024xf32>
    %c0_4 = arith.constant 0 : index
    %c0_5 = arith.constant 0 : index
    %14 = vector.load %arg3[%c0_4, %c0_5] : memref<16x1024xf32, #tpu.memory_space<vmem>>, vector<16x1024xf32>
    tpu.vector_store %arg3[%c0_4, %c0_5], %13 {strides = array<i32>} : memref<16x1024xf32, #tpu.memory_space<vmem>>, vector<16x1024xf32>,
    return
  }
  func.func @transform_0(%arg0: i32) -> i32 {
    %c0_i32 = arith.constant 0 : i32
    %c0_i32_0 = arith.constant 0 : i32
    return %c0_i32 : i32
  }
  func.func @transform_1(%arg0: i32) -> (i32, i32) {
    %c0_i32 = arith.constant 0 : i32
    %c0_i32_0 = arith.constant 0 : i32
    return %arg0, %c0_i32 : i32, i32
  }
  func.func @transform_2(%arg0: i32) -> (i32, i32) {
    %c0_i32 = arith.constant 0 : i32
    %c0_i32_0 = arith.constant 0 : i32
    return %arg0, %c0_i32 : i32, i32
  }
}

</mosaic_0001>

<bundles_post_ra>
// kernel: tpu_custom_call.1
= control target key start
LH: loop header
LB: loop body
LE: loop exit
PB: predicated region body
PF: predicated region fallthrough
CT: control target
= control target key end

     0   :  { %7 = vsyncpa [#allocation5], 0  ;;  %s917_s0 = inlined_call_operand.hbm [shape: f32[2], index: 0, kind: input, shape index: {}]   ;;  %s918_s1 = inlined_call_operand.hbm [shape: f32[20,1024], index: 1, kind: input, shape index: {}]   ;;  %s919_s2 = inlined_call_operand.hbm [shape: f32[20,1024], index: 2, kind: output, shape index: {}]  }
   0x1   :  { %8 = vsyncpa [#allocation3], 0 }
   0x2   :  { %10 = vsyncpa [#allocation3 + $0x1], 0 }
   0x3   :  { %11 = vsyncpa [#allocation4], 0 }
   0x4   :  { %13 = vsyncpa [#allocation4 + $0x1], 0  ;;  %s683_s9 = smov 0   ;;  %s685_s10 = smov 0  }
   0x5   :  { %s687_s11 = smov 0   ;;  %s689_s12 = smov 0  }
   0x6 LB: > { %s704_s13 = sadd.s32 4294967295, %s659_s12   ;;  %s433_s14 = sadd.s32 4294967294, %s659_s12   ;;  %s659_s12 = sphi %s689_s12, %s935_s12   ;;  %s655_s11 = sphi %s687_s11, %s934_s11   ;;  %s651_s10 = sphi %s685_s10, %s933_s10   ;;  %s647_s9 = sphi %s683_s9, %s932_s9  }
   0x7   : > { %s708_s15 = sadd.s32 1, %s659_s12   ;;  %s47_s16 = sadd.s32 1, %s655_s11 }
   0x8   : > { %s44_s17 = ssub.s32 %s659_s12, %s708_s15  ;;  %p54_p0 = scmp.ne.s32.totalorder %s655_s11, %s651_s10 }
   0x9   : > { %p45_p1 = scmp.eq.s32.totalorder %s44_s17, 0  ;;  %p55_p2 = scmp.eq.s32.totalorder %s659_s12, 0 }
   0xa   : > { %p60_p3 = scmp.ne.s32.totalorder %s651_s10, %s647_s9  ;;  %p921_p4 = scmp.eq.s32.totalorder %s704_s13, 0 }
   0xb   : > { %s720_s18 = scalar_select %p45_p1, %s655_s11, %s47_s16  }
   0xc   : > { %p722_p5 = por %p55_p2, %p54_p0  ;;  %p728_p6 = por %p921_p4, %p60_p3 }
   0xd   : > { %p84_p7 = scmp.eq.s32.totalorder %s704_s13, 1  ;;  %p90_p8 = scmp.eq.s32.totalorder %s433_s14, 1 }
   0xe   : > { %p434_p9 = scmp.ge.s32.totalorder %s659_s12, 1  ;;  %p97_p10 = scmp.lt.s32.totalorder %s659_s12, 3 }
   0xf   : > { %p735_p11 = por %p84_p7, %p54_p0  ;;  %p739_p12 = por %p90_p8, %p60_p3 }
  0x10   : > { %p743_p13 = pnand %p434_p9, %p97_p10  ;;  %s661_s24 = smov [#allocation2]  }
  0x11   : > { %s924_s21 = scalar_select %p735_p11, 1, 0 }
  0x12   : > { %s925_s22 = scalar_select %p739_p12, 1, 0 }
  0x13   : > { %p474_p1 = pneg %p743_p13  ;;  %p920_p0 = scmp.ge.s32.totalorder %s659_s12, 2 }
  0x15   : > { %p475_p2 = pnand %p474_p1, %p921_p4  ;;  %115 = sbr.rel (%p920_p0) target bundleno = 58 (0x3a), region = 20 }
  0x17   : > { %477 = dma.hbm_to_smem (!%p475_p2), %s917_s0, 16, %s661_s24, [#allocation5]  }
  0x1a   : > { %118 = sbr.rel (!%p722_p5) target bundleno = 58 (0x3a), region = 24  ;;  %s119_s27 = sand.u32 (%p722_p5), 1, %s655_s11  }
  0x1b   : > { %s438_s28 = sshll.u32 (%p722_p5), %s659_s12, 1  ;;  %s437_s29 = sshll.u32 (%p722_p5), %s119_s27, 7 }
  0x1c   : > { %s125_s30 = ssub.s32 (%p722_p5), 3, %s438_s28  ;;  %s764_s5 = scalar_lea.sflag (%p722_p5), [#allocation3], %s119_s27 }
  0x1d   : > { %p126_p3 = scmp.lt.s32.totalorder (%p722_p5), %s125_s30, 2  ;;  %s123_s6 = scalar_lea.vmem (%p722_p5), [#allocation6], %s437_s29 }
  0x1f   : > { %s937_s30 = smov (!%p126_p3, %s125_s30), 2 }
  0x20   : > { %s761_s3 = sshll.u32 %s937_s30, 10 }
  0x21   : > { %s131_s4 = ssub.s32 2048, %s761_s3 }
  0x22   : > { %132 = vsyncadd %s764_s5, %s131_s4  ;;  %p441_p5 = scmp.ne.s32.totalorder %s761_s3, 0  ;;  %s464_s7 = sshll.u32 %s659_s12, 11 }
  0x23   : > { %s772_s16 = scalar_lea.hbm %s918_s1, %s464_s7  ;;  %s138_s17 = sshll.u32 %s123_s6, 4  ;;  %s774_s17 = int_to_ptr.vmem [resolvable:$true] %s138_s17 }
  0x24   : > { %s565_s19 = scalar_lea.hbm %s772_s16, %s761_s3  ;;  %s569_s26 = scalar_lea.hbm %s918_s1, 3072 }
  0x25   : > { %p566_p7 = scmp.ne.s32.totalorder %s772_s16, %s565_s19  ;;  %p570_p10 = scmp.lt.s32.totalorder %s772_s16, %s918_s1 }
  0x26   : > { %p571_p1 = scmp.lt.s32.totalorder %s569_s26, %s565_s19 }
  0x27   : > { %p567_p8 = pnand %p566_p7, %p441_p5 }
  0x28   : > { %p572_p2 = por %p571_p1, %p570_p10 }
  0x29   : > { %p568_p9 = pneg %p567_p8 }
  0x2b   : > { %p573_p3 = pnand %p572_p2, %p568_p9 }
  0x2d   : > { %576 = shalt.err (!%p573_p3)
}
  0x2e   : > { %s577_s29 = scalar_lea.vmem %s774_s17, %s761_s3  ;;  %s662_s30 = smov [#allocation6]  }
  0x2f   : > { %p578_p7 = scmp.ne.s32.totalorder %s774_s17, %s577_s29  ;;  %s581_s4 = sshll.u32 %s662_s30, 4  ;;  %s582_s4 = int_to_ptr.vmem [resolvable:$false] %s581_s4 }
  0x30   : > { %s583_s6 = scalar_lea.vmem %s582_s4, 4096  ;;  %p584_p4 = scmp.lt.s32.totalorder %s774_s17, %s582_s4 }
  0x31   : > { %p579_p8 = pnand %p578_p7, %p441_p5  ;;  %p585_p12 = scmp.lt.s32.totalorder %s583_s6, %s577_s29 }
  0x33   : > { %p580_p0 = pneg %p579_p8  ;;  %p586_p11 = por %p585_p12, %p584_p4 }
  0x35   : > { %p587_p10 = pnand %p586_p11, %p580_p0 }
  0x37   : > { %590 = shalt.err (!%p587_p10)
}
  0x38   : > { %s663_s7 = smov 1024   ;;  %s664_s8 = smov 64  }
  0x39   : > { %144 = dma.hbm_to_vmem [thread:$0]  (%p441_p5), %s772_s16, %s761_s3, %s774_s17, %s764_s5, %s663_s7, %s663_s7, %s664_s8  }
  0x3a PF: > { %150 = sbr.rel (%p743_p13) target bundleno = 144 (0x90), region = 28  ;;  %p927_p9 = scmp.eq.s32.totalorder (!%p743_p13), %s704_s13, 0 }
  0x3f   : > { %634 = dma.done.wait (%p927_p9), [#allocation5], 16   ;;  %p928_p4 = pmov %p927_p9 }
  0x40   : > { %s807_s14 = sand.u32 1, %s651_s10  }
  0x41   : > { %636 = vsyncadd (%p928_p4), [#allocation5], 4294967280  ;;  %s448_s19 = sshll.u32 %s807_s14, 7  ;;  %s157_s3 = scalar_lea.sflag [#allocation3], %s807_s14 }
  0x42   : > { %s813_s5 = scalar_lea.vmem [#allocation6], %s448_s19 }
  0x43   : > { %638 = dma.done.wait (%p728_p6), %s157_s3, 2048  }
  0x44   : > { %640 = vsyncadd (%p728_p6), %s157_s3, 4294965248 }
  0x45   : > { %165 = sfence }
  0x46   : > { %s194_s23 = sld [smem:[#allocation2]]  ;;  %v196_v0 = vld [vmem:[%s813_s5] sm:$0xff]  ;;  %v197_v1 = vld [vmem:[%s813_s5 + $0x8] sm:$0xff]  ;;  %v198_v2 = vld [vmem:[%s813_s5 + $0x10] sm:$0xff]  ;;  %s837_s20 = scalar_lea.vmem [#allocation7], %s448_s19 }
  0x47   : > { %s450_s16 = sld [smem:[#allocation2 + $0x1]]  ;;  %v199_v3 = vld [vmem:[%s813_s5 + $0x18] sm:$0xff]  ;;  %v200_v4 = vld [vmem:[%s813_s5 + $0x20] sm:$0xff]  ;;  %v201_v5 = vld [vmem:[%s813_s5 + $0x28] sm:$0xff]  ;;  %s327_s17 = scalar_lea.sflag [#allocation4], %s807_s14 }
  0x48   : > { %v202_v6 = vld [vmem:[%s813_s5 + $0x30] sm:$0xff]  ;;  %v203_v8 = vld [vmem:[%s813_s5 + $0x38] sm:$0xff]  ;;  %v204_v25 = vld [vmem:[%s813_s5 + $0x40] sm:$0xff]  ;;  %p929_p6 = scmp.ne.s32.totalorder %s924_s21, 0 }
  0x49   : > { %v205_v26 = vld [vmem:[%s813_s5 + $0x48] sm:$0xff]  ;;  %v206_v30 = vld [vmem:[%s813_s5 + $0x50] sm:$0xff]  ;;  %v207_v31 = vld [vmem:[%s813_s5 + $0x58] sm:$0xff]  ;;  %s452_s24 = sshll.u32 (%p929_p6), %s704_s13, 1 }
  0x4a   : > { %v208_v32 = vld [vmem:[%s813_s5 + $0x60] sm:$0xff]  ;;  %v209_v37 = vld [vmem:[%s813_s5 + $0x68] sm:$0xff]  ;;  %v210_v50 = vld [vmem:[%s813_s5 + $0x70] sm:$0xff]  ;;  %s335_s25 = ssub.s32 (%p929_p6), 3, %s452_s24 }
  0x4b   : > { %v211_v51 = vld [vmem:[%s813_s5 + $0x78] sm:$0xff]  ;;  %p336_p11 = scmp.lt.s32.totalorder (%p929_p6), %s335_s25, 2 }
  0x4c   : > { %v212_v7 = vstv %s194_s23 }
  0x4d   : > { %v213_v9 = vmul.f32 %v212_v7, %v196_v0  ;;  %v229_v10 = vstv %s450_s16  ;;  %v214_v11 = vmul.f32 %v212_v7, %v197_v1  ;;  %v215_v12 = vmul.f32 %v212_v7, %v198_v2 }
  0x4e   : > { %v216_v13 = vmul.f32 %v212_v7, %v199_v3  ;;  %v217_v14 = vmul.f32 %v212_v7, %v200_v4  ;;  %v218_v15 = vmul.f32 %v212_v7, %v201_v5  ;;  %v219_v16 = vmul.f32 %v212_v7, %v202_v6 }
  0x4f   : > { %v230_v17 = vadd.f32 %v229_v10, %v213_v9  ;;  %v231_v18 = vadd.f32 %v229_v10, %v214_v11  ;;  %v232_v19 = vadd.f32 %v229_v10, %v215_v12  ;;  %v220_v20 = vmul.f32 %v212_v7, %v203_v8 }
  0x50   : > { %v233_v21 = vadd.f32 %v229_v10, %v216_v13  ;;  %v234_v22 = vadd.f32 %v229_v10, %v217_v14  ;;  %v235_v23 = vadd.f32 %v229_v10, %v218_v15  ;;  %v236_v24 = vadd.f32 %v229_v10, %v219_v16 }
  0x51   : > { %v246_v27 = vmul.f32 0.5, %v230_v17  ;;  %v247_v28 = vmul.f32 0.5, %v231_v18  ;;  %v248_v29 = vmul.f32 0.5, %v232_v19  ;;  %v237_v36 = vadd.f32 %v229_v10, %v220_v20 }
  0x52   : > { %v249_v33 = vmul.f32 0.5, %v233_v21  ;;  %v250_v34 = vmul.f32 0.5, %v234_v22  ;;  %v251_v35 = vmul.f32 0.5, %v235_v23  ;;  %v252_v38 = vmul.f32 0.5, %v236_v24 }
  0x53   : > { %522 = vtanh.f32 %v246_v27  ;;  %v221_v39 = vmul.f32 %v212_v7, %v204_v25  ;;  %v222_v40 = vmul.f32 %v212_v7, %v205_v26  ;;  %v223_v41 = vmul.f32 %v212_v7, %v206_v30 }
  0x54   : > { %524 = vtanh.f32 %v247_v28  ;;  %v224_v42 = vmul.f32 %v212_v7, %v207_v31  ;;  %v225_v43 = vmul.f32 %v212_v7, %v208_v32  ;;  %v226_v46 = vmul.f32 %v212_v7, %v209_v37 }
  0x55   : > { %526 = vtanh.f32 %v248_v29  ;;  %v238_v44 = vadd.f32 %v229_v10, %v221_v39  ;;  %v239_v45 = vadd.f32 %v229_v10, %v222_v40  ;;  %v253_v47 = vmul.f32 0.5, %v237_v36 }
  0x56   : > { %528 = vtanh.f32 %v249_v33  ;;  %v240_v48 = vadd.f32 %v229_v10, %v223_v41  ;;  %v241_v49 = vadd.f32 %v229_v10, %v224_v42  ;;  %v242_v53 = vadd.f32 %v229_v10, %v225_v43 }
  0x57   : > { %530 = vtanh.f32 %v250_v34  ;;  %v254_v52 = vmul.f32 0.5, %v238_v44  ;;  %v255_v54 = vmul.f32 0.5, %v239_v45  ;;  %v243_v55 = vadd.f32 %v229_v10, %v226_v46 }
  0x58   : > { %532 = vtanh.f32 %v251_v35  ;;  %v256_v56 = vmul.f32 0.5, %v240_v48  ;;  %v227_v57 = vmul.f32 %v212_v7, %v210_v50  ;;  %v228_v58 = vmul.f32 %v212_v7, %v211_v51 }
  0x59   : > { %534 = vtanh.f32 %v252_v38  ;;  %v257_v59 = vmul.f32 0.5, %v241_v49  ;;  %v258_v60 = vmul.f32 0.5, %v242_v53  ;;  %v259_v63 = vmul.f32 0.5, %v243_v55 }
  0x5a   : > { %536 = vtanh.f32 %v253_v47  ;;  %v244_v61 = vadd.f32 %v229_v10, %v227_v57  ;;  %v245_v62 = vadd.f32 %v229_v10, %v228_v58 }
  0x5b   : > { %538 = vtanh.f32 %v254_v52 }
  0x5c   : > { %540 = vtanh.f32 %v255_v54  ;;  %v260_v0 = vmul.f32 0.5, %v244_v61  ;;  %v261_v1 = vmul.f32 0.5, %v245_v62 }
  0x5d   : > { %542 = vtanh.f32 %v256_v56 }
  0x5e   : > { %544 = vtanh.f32 %v257_v59 }
  0x5f   : > { %546 = vtanh.f32 %v258_v60 }
  0x60   : > { %v523_v2 = vpop.eup %522  ;;  %548 = vtanh.f32 %v259_v63 }
  0x61   : > { %v525_v3 = vpop.eup %524  ;;  %v278_v4 = vmul.f32 0.5, %v523_v2  ;;  %550 = vtanh.f32 %v260_v0 }
  0x62   : > { %v527_v5 = vpop.eup %526  ;;  %v279_v6 = vmul.f32 0.5, %v525_v3  ;;  %552 = vtanh.f32 %v261_v1 }
  0x63   : > { %v529_v7 = vpop.eup %528  ;;  %v294_v8 = vadd.f32 0.5, %v278_v4  ;;  %v280_v9 = vmul.f32 0.5, %v527_v5 }
  0x64   : > { %v531_v10 = vpop.eup %530  ;;  %v295_v11 = vadd.f32 0.5, %v279_v6  ;;  %v281_v12 = vmul.f32 0.5, %v529_v7 }
  0x65   : > { %v533_v13 = vpop.eup %532  ;;  %310 = vst [vmem:[%s837_s20] sm:$0xff] %v294_v8  ;;  %v296_v14 = vadd.f32 0.5, %v280_v9  ;;  %v282_v15 = vmul.f32 0.5, %v531_v10 }
  0x66   : > { %v535_v16 = vpop.eup %534  ;;  %311 = vst [vmem:[%s837_s20 + $0x8] sm:$0xff] %v295_v11  ;;  %v297_v17 = vadd.f32 0.5, %v281_v12  ;;  %v283_v18 = vmul.f32 0.5, %v533_v13 }
  0x67   : > { %v537_v19 = vpop.eup %536  ;;  %312 = vst [vmem:[%s837_s20 + $0x10] sm:$0xff] %v296_v14  ;;  %v298_v20 = vadd.f32 0.5, %v282_v15  ;;  %v284_v21 = vmul.f32 0.5, %v535_v16 }
  0x68   : > { %v539_v22 = vpop.eup %538  ;;  %313 = vst [vmem:[%s837_s20 + $0x18] sm:$0xff] %v297_v17  ;;  %v299_v23 = vadd.f32 0.5, %v283_v18  ;;  %v285_v24 = vmul.f32 0.5, %v537_v19 }
  0x69   : > { %v541_v25 = vpop.eup %540  ;;  %314 = vst [vmem:[%s837_s20 + $0x20] sm:$0xff] %v298_v20  ;;  %v300_v26 = vadd.f32 0.5, %v284_v21  ;;  %v286_v27 = vmul.f32 0.5, %v539_v22 }
  0x6a   : > { %v543_v28 = vpop.eup %542  ;;  %315 = vst [vmem:[%s837_s20 + $0x28] sm:$0xff] %v299_v23  ;;  %v301_v29 = vadd.f32 0.5, %v285_v24  ;;  %v287_v30 = vmul.f32 0.5, %v541_v25 }
  0x6b   : > { %v545_v31 = vpop.eup %544  ;;  %316 = vst [vmem:[%s837_s20 + $0x30] sm:$0xff] %v300_v26  ;;  %v302_v32 = vadd.f32 0.5, %v286_v27  ;;  %v288_v33 = vmul.f32 0.5, %v543_v28 }
  0x6c   : > { %v547_v34 = vpop.eup %546  ;;  %317 = vst [vmem:[%s837_s20 + $0x38] sm:$0xff] %v301_v29  ;;  %v303_v35 = vadd.f32 0.5, %v287_v30  ;;  %v289_v36 = vmul.f32 0.5, %v545_v31 }
  0x6d   : > { %v549_v37 = vpop.eup %548  ;;  %318 = vst [vmem:[%s837_s20 + $0x40] sm:$0xff] %v302_v32  ;;  %v304_v38 = vadd.f32 0.5, %v288_v33  ;;  %v290_v39 = vmul.f32 0.5, %v547_v34 }
  0x6e   : > { %v551_v40 = vpop.eup %550  ;;  %319 = vst [vmem:[%s837_s20 + $0x48] sm:$0xff] %v303_v35  ;;  %v305_v41 = vadd.f32 0.5, %v289_v36  ;;  %v291_v42 = vmul.f32 0.5, %v549_v37 }
  0x6f   : > { %v553_v43 = vpop.eup %552  ;;  %320 = vst [vmem:[%s837_s20 + $0x50] sm:$0xff] %v304_v38  ;;  %v306_v44 = vadd.f32 0.5, %v290_v39  ;;  %v292_v45 = vmul.f32 0.5, %v551_v40 }
  0x70   : > { %321 = vst [vmem:[%s837_s20 + $0x58] sm:$0xff] %v305_v41  ;;  %v307_v46 = vadd.f32 0.5, %v291_v42  ;;  %v293_v47 = vmul.f32 0.5, %v553_v43  ;;  %333 = sbr.rel (!%p929_p6) target bundleno = 144 (0x90), region = 40 }
  0x71   : > { %322 = vst [vmem:[%s837_s20 + $0x60] sm:$0xff] %v306_v44  ;;  %v308_v48 = vadd.f32 0.5, %v292_v45 }
  0x72   : > { %323 = vst [vmem:[%s837_s20 + $0x68] sm:$0xff] %v307_v46  ;;  %v309_v49 = vadd.f32 0.5, %v293_v47 }
  0x73   : > { %324 = vst [vmem:[%s837_s20 + $0x70] sm:$0xff] %v308_v48 }
  0x74   : > { %325 = vst [vmem:[%s837_s20 + $0x78] sm:$0xff] %v309_v49 }
  0x75   : > { %s939_s25 = smov (!%p336_p11, %s335_s25), 2 }
  0x76   : > { %s859_s26 = sshll.u32 %s939_s25, 10 }
  0x77   : > { %s341_s27 = ssub.s32 2048, %s859_s26 }
  0x78   : > { %342 = vsyncadd %s327_s17, %s341_s27  ;;  %p455_p12 = scmp.ne.s32.totalorder %s859_s26, 0  ;;  %s467_s21 = sshll.u32 %s704_s13, 11 }
  0x79   : > { %s869_s30 = scalar_lea.hbm %s919_s2, %s467_s21  ;;  %s348_s4 = sshll.u32 %s837_s20, 4  ;;  %s872_s4 = int_to_ptr.vmem [resolvable:$true] %s348_s4 }
  0x7a   : > { %s591_s6 = scalar_lea.vmem %s872_s4, %s859_s26  ;;  %s665_s7 = smov [#allocation7]  }
  0x7b   : > { %p592_p13 = scmp.ne.s32.totalorder %s872_s4, %s591_s6  ;;  %s595_s8 = sshll.u32 %s665_s7, 4  ;;  %s596_s8 = int_to_ptr.vmem [resolvable:$false] %s595_s8 }
  0x7c   : > { %s597_s13 = scalar_lea.vmem %s596_s8, 4096  ;;  %p598_p1 = scmp.lt.s32.totalorder %s872_s4, %s596_s8 }
  0x7d   : > { %p593_p0 = pnand %p592_p13, %p455_p12  ;;  %p599_p2 = scmp.lt.s32.totalorder %s597_s13, %s591_s6 }
  0x7f   : > { %p594_p5 = pneg %p593_p0  ;;  %p600_p3 = por %p599_p2, %p598_p1 }
  0x81   : > { %p601_p7 = pnand %p600_p3, %p594_p5 }
  0x83   : > { %604 = shalt.err (!%p601_p7)
}
  0x84   : > { %s605_s19 = scalar_lea.hbm %s869_s30, %s859_s26  ;;  %s609_s23 = scalar_lea.hbm %s919_s2, 3072 }
  0x85   : > { %p606_p8 = scmp.ne.s32.totalorder %s869_s30, %s605_s19  ;;  %p610_p4 = scmp.lt.s32.totalorder %s869_s30, %s919_s2 }
  0x86   : > { %p611_p6 = scmp.lt.s32.totalorder %s609_s23, %s605_s19 }
  0x87   : > { %p607_p10 = pnand %p606_p8, %p455_p12 }
  0x88   : > { %p612_p11 = por %p611_p6, %p610_p4 }
  0x89   : > { %p608_p9 = pneg %p607_p10 }
  0x8b   : > { %p613_p13 = pnand %p612_p11, %p608_p9 }
  0x8d   : > { %616 = shalt.err (!%p613_p13)
}
  0x8e   : > { %s666_s24 = smov 1024   ;;  %s667_s25 = smov 64  }
  0x8f   : > { %354 = dma.vmem_to_hbm [thread:$0]  (%p455_p12), %s872_s4, %s859_s26, %s869_s30, %s327_s17, %s666_s24, %s666_s24, %s667_s25  }
  0x90 PF: > { %s363_s27 = sand.u32 1, %s647_s9   ;;  %p930_p0 = scmp.ne.s32.totalorder %s925_s22, 0 }
  0x91   : > { %p931_p5 = scmp.ge.s32.totalorder %s659_s12, 2  ;;  %s364_s21 = scalar_lea.sflag [#allocation4], %s363_s27 }
  0x93   : > { %p479_p1 = pnand %p931_p5, %p930_p0 }
  0x95   : > { %p480_p2 = pneg %p479_p1 }
  0x97   : > { %642 = dma.done.wait (%p480_p2), %s364_s21, 2048  }
  0x98   : > { %644 = vsyncadd (%p480_p2), %s364_s21, 4294965248  ;;  %p16_p3 = scmp.ge.s32.totalorder %s708_s15, 4   ;;  %s932_s9 = smov %s651_s10 }
  0x99   : > { %s933_s10 = smov %s655_s11  ;;  %s934_s11 = smov %s720_s18 }
  0x9a   : > { %s935_s12 = smov %s708_s15  ;;  %18 = sbr.rel (!%p16_p3) target bundleno = 6 (0x6), region = 78 }
  0x9f   :  { %369 = vsyncpa [#allocation3], 1 }
  0xa0   :  { %371 = vsyncpa [#allocation3 + $0x1], 1 }
  0xa1   :  { %372 = vsyncpa [#allocation4], 1 }
  0xa2   :  { %374 = vsyncpa [#allocation4 + $0x1], 1 }
  0xa3   :  { %375 = vsyncpa [#allocation5], 1 }
  0xa4   :  { %377 = vsyncpa [#allocation5 + $0x1], 1 }

</bundles_post_ra>
